<compile_context>
chip_gen: v5e
topology: v5e:2x2
jax: 0.10.0
libtpu: 0.0.40
codegen_flags: <defaults>
</compile_context>

<pallas_src>
import jax
import jax.numpy as jnp
from jax import lax
from jax.experimental import pallas as pl
from jax.experimental.pallas import tpu as pltpu

_LANE = 128      # TPU lane width (last dim of every block).
_SUB = 8         # sublanes per f32 vreg; inner strip-mine chunk.


def _toy_mlp_kernel(w1_ref, b1_ref, w2_ref, b2_ref, x_ref, o_ref):
    # x_ref : (3, sb, 128) VMEM tile  -- feature k -> x_ref[k] is a (sb,128) plane.
    # o_ref : (2, sb, 128) VMEM tile.
    # w1_ref: (9,) SMEM = lin1.weight (out,in) row-major; b1_ref: (3,) SMEM.
    # w2_ref: (6,) SMEM = lin2.weight (out,in) row-major; b2_ref: (2,) SMEM.
    sb = x_ref.shape[1]

    # Load the 20 parameter scalars once from SMEM.
    w1 = [[w1_ref[3 * j + k] for k in range(3)] for j in range(3)]
    b1 = [b1_ref[j] for j in range(3)]
    w2 = [[w2_ref[3 * j + k] for k in range(3)] for j in range(2)]
    b2 = [b2_ref[j] for j in range(2)]

    def compute_rows(r, nrows):
        # Process `nrows` sublane rows starting at row `r` (all 128 lanes).
        x0 = x_ref[0, pl.ds(r, nrows), :]
        x1 = x_ref[1, pl.ds(r, nrows), :]
        x2 = x_ref[2, pl.ds(r, nrows), :]
        # lin1 + ReLU: h_j = relu(sum_k w1[j,k] * x_k + b1[j])   (VPU FMAs)
        hs = [
            jnp.maximum(w1[j][0] * x0 + w1[j][1] * x1 + w1[j][2] * x2 + b1[j], 0.0)
            for j in range(3)
        ]
        # lin2: y_j = sum_k w2[j,k] * h_k + b2[j]
        for j in range(2):
            y = w2[j][0] * hs[0] + w2[j][1] * hs[1] + w2[j][2] * hs[2] + b2[j]
            o_ref[j, pl.ds(r, nrows), :] = y.astype(o_ref.dtype)

    n_full = sb // _SUB          # static
    rem = sb - n_full * _SUB     # static

    if n_full > 0:
        def body(c, carry):
            compute_rows(pl.multiple_of(c * _SUB, _SUB), _SUB)
            return carry
        lax.fori_loop(0, n_full, body, 0, unroll=False)
    if rem > 0:
        compute_rows(n_full * _SUB, rem)


def toy_model_forward_lane_dense(x3, w1, b1, w2, b2, *, block_lanes=256 * 1024):
    """Lane-dense entry point: x3 is (3, nblk, 128) f32, returns (2, nblk, 128)."""
    f_in, nblk, lane = x3.shape
    assert f_in == 3 and lane == _LANE, x3.shape

    # Sublane tile: as large as possible (amortize per-step overhead) while
    # staying a multiple of 8 (or the full array extent) and within VMEM.
    sb_max = max(_SUB, block_lanes // _LANE)
    if nblk <= sb_max:
        sb = nblk                                  # full extent -> always legal
    else:
        sb = max(_SUB, (sb_max // _SUB) * _SUB)    # multiple of 8 sublanes
    grid = (pl.cdiv(nblk, sb),)                    # ragged last block is OOB-masked

    # Flatten params to 1D for compact SMEM residency (torch (out,in) layout
    # kept; the "transpose" is just scalar index arithmetic in the kernel).
    w1f = w1.reshape(-1).astype(jnp.float32)       # (9,)
    b1f = b1.reshape(-1).astype(jnp.float32)       # (3,)
    w2f = w2.reshape(-1).astype(jnp.float32)       # (6,)
    b2f = b2.reshape(-1).astype(jnp.float32)       # (2,)

    def smem_spec(a):
        return pl.BlockSpec(a.shape, lambda i: (0,), memory_space=pltpu.SMEM)

    return pl.pallas_call(
        _toy_mlp_kernel,
        out_shape=jax.ShapeDtypeStruct((2, nblk, _LANE), jnp.float32),
        grid=grid,
        in_specs=[
            smem_spec(w1f), smem_spec(b1f), smem_spec(w2f), smem_spec(b2f),
            pl.BlockSpec((3, sb, _LANE), lambda i: (0, i, 0),
                         memory_space=pltpu.VMEM),
        ],
        out_specs=pl.BlockSpec((2, sb, _LANE), lambda i: (0, i, 0),
                               memory_space=pltpu.VMEM),
        compiler_params=pltpu.CompilerParams(
            dimension_semantics=("parallel",),
            vmem_limit_bytes=32 * 1024 * 1024,
        ),
        cost_estimate=pl.CostEstimate(
            flops=30 * nblk * _LANE,                    # ~15 mul + 15 add / element
            transcendentals=0,
            bytes_accessed=20 * nblk * _LANE + 80,      # dense (3+2)*4 B/elem + params
        ),
    )(w1f, b1f, w2f, b2f, x3)


def toy_model_forward(x, w1, b1, w2, b2, *, block_lanes=256 * 1024):
    """x: (B, 3) f32. w1: (3,3) torch layout (out,in). b1: (1,3). w2: (2,3). b2: (1,2)."""
    B, f_in = x.shape
    assert f_in == 3, x.shape

    # Lane-dense layout: batch on the 128-lane axis, packed into dense
    # (3, nblk, 128) vreg planes.  Only the final sub-128 remainder is padded.
    # TODO(synk): if the producer/consumer can provide/accept the lane-dense
    # (3, nblk, 128)/(2, nblk, 128) layout directly, call
    # toy_model_forward_lane_dense and skip these relayout passes entirely.
    nblk = pl.cdiv(B, _LANE)
    bpad = nblk * _LANE
    x_t = x.T                                          # (3, B)
    if bpad != B:
        x_t = jnp.pad(x_t, ((0, 0), (0, bpad - B)))    # pad < 128 columns only
    x3 = x_t.reshape(3, nblk, _LANE)

    out3 = toy_model_forward_lane_dense(x3, w1, b1, w2, b2, block_lanes=block_lanes)
    return out3.reshape(2, bpad)[:, :B].T              # (B, 2)


def reference_forward(x, w1, b1, w2, b2):
    h = jnp.maximum(x @ w1.T + b1, 0.0)
    return h @ w2.T + b2


if __name__ == "__main__":
    # Deterministic parameters, matching ToyModel.__init__ exactly.
    w1 = jnp.arange(-4.0, 5.0, dtype=jnp.float32).reshape(3, 3)   # lin1.weight (out=3, in=3)
    b1 = jnp.zeros((1, 3), dtype=jnp.float32)                     # lin1.bias
    w2 = jnp.arange(-3.0, 3.0, dtype=jnp.float32).reshape(2, 3)   # lin2.weight (out=2, in=3)
    b2 = jnp.ones((1, 2), dtype=jnp.float32)                      # lin2.bias

    key = jax.random.PRNGKey(0)

    # 1) Canonical module input: torch.rand(2, 3) analogue.
    x_small = jax.random.uniform(key, (2, 3), dtype=jnp.float32)
    out = jax.block_until_ready(toy_model_forward(x_small, w1, b1, w2, b2))
    ref = reference_forward(x_small, w1, b1, w2, b2)
    assert out.shape == (2, 2), out.shape
    assert jnp.allclose(out, ref, atol=1e-5, rtol=1e-5), (out, ref)

    # 2) Ragged batch (exercises sub-128 pad + inner fori_loop + tail rows).
    x_med = jax.random.uniform(jax.random.PRNGKey(1), (1202, 3), dtype=jnp.float32)
    out2 = jax.block_until_ready(toy_model_forward(x_med, w1, b1, w2, b2))
    ref2 = reference_forward(x_med, w1, b1, w2, b2)
    assert out2.shape == (1202, 2), out2.shape
    assert jnp.allclose(out2, ref2, atol=1e-4, rtol=1e-5)

    # 3) Small block_lanes forces a multi-step grid with a ragged (OOB-masked)
    #    last block, exercising the pipelined/tiled path.
    out3 = jax.block_until_ready(
        toy_model_forward(x_med, w1, b1, w2, b2, block_lanes=1024))
    assert jnp.allclose(out3, ref2, atol=1e-4, rtol=1e-5)

    print("KERNEL_OK")
</pallas_src>

<mosaic_0001>
module attributes {stable_mosaic.version = 11 : i64} {
  func.func @_toy_mlp_kernel(%arg0: i32, %arg1: memref<9xf32, #tpu.memory_space<smem>>, %arg2: memref<3xf32, #tpu.memory_space<smem>>, %arg3: memref<6xf32, #tpu.memory_space<smem>>, %arg4: memref<2xf32, #tpu.memory_space<smem>>, %arg5: memref<3x1x128xf32, #tpu.memory_space<vmem>>, %arg6: memref<2x1x128xf32, #tpu.memory_space<vmem>>) attributes {dimension_semantics = [#tpu.dimension_semantics<parallel>], iteration_bounds = array<i64: 1>, scalar_prefetch = 0 : i64, scratch_operands = 0 : i64, tpu.core_type = #tpu.core_type<tc>, window_params = [{transform_indices = @transform_0, window_bounds = array<i64: 9>}, {transform_indices = @transform_1, window_bounds = array<i64: 3>}, {transform_indices = @transform_2, window_bounds = array<i64: 6>}, {transform_indices = @transform_3, window_bounds = array<i64: 2>}, {transform_indices = @transform_4, window_bounds = array<i64: 3, 1, 128>}, {transform_indices = @transform_5, window_bounds = array<i64: 2, 1, 128>}]} {
    %c0 = arith.constant 0 : index
    %0 = memref.load %arg1[%c0] : memref<9xf32, #tpu.memory_space<smem>>
    %c1 = arith.constant 1 : index
    %1 = memref.load %arg1[%c1] : memref<9xf32, #tpu.memory_space<smem>>
    %c2 = arith.constant 2 : index
    %2 = memref.load %arg1[%c2] : memref<9xf32, #tpu.memory_space<smem>>
    %c3 = arith.constant 3 : index
    %3 = memref.load %arg1[%c3] : memref<9xf32, #tpu.memory_space<smem>>
    %c4 = arith.constant 4 : index
    %4 = memref.load %arg1[%c4] : memref<9xf32, #tpu.memory_space<smem>>
    %c5 = arith.constant 5 : index
    %5 = memref.load %arg1[%c5] : memref<9xf32, #tpu.memory_space<smem>>
    %c6 = arith.constant 6 : index
    %6 = memref.load %arg1[%c6] : memref<9xf32, #tpu.memory_space<smem>>
    %c7 = arith.constant 7 : index
    %7 = memref.load %arg1[%c7] : memref<9xf32, #tpu.memory_space<smem>>
    %c8 = arith.constant 8 : index
    %8 = memref.load %arg1[%c8] : memref<9xf32, #tpu.memory_space<smem>>
    %c0_0 = arith.constant 0 : index
    %9 = memref.load %arg2[%c0_0] : memref<3xf32, #tpu.memory_space<smem>>
    %c1_1 = arith.constant 1 : index
    %10 = memref.load %arg2[%c1_1] : memref<3xf32, #tpu.memory_space<smem>>
    %c2_2 = arith.constant 2 : index
    %11 = memref.load %arg2[%c2_2] : memref<3xf32, #tpu.memory_space<smem>>
    %c0_3 = arith.constant 0 : index
    %12 = memref.load %arg3[%c0_3] : memref<6xf32, #tpu.memory_space<smem>>
    %c1_4 = arith.constant 1 : index
    %13 = memref.load %arg3[%c1_4] : memref<6xf32, #tpu.memory_space<smem>>
    %c2_5 = arith.constant 2 : index
    %14 = memref.load %arg3[%c2_5] : memref<6xf32, #tpu.memory_space<smem>>
    %c3_6 = arith.constant 3 : index
    %15 = memref.load %arg3[%c3_6] : memref<6xf32, #tpu.memory_space<smem>>
    %c4_7 = arith.constant 4 : index
    %16 = memref.load %arg3[%c4_7] : memref<6xf32, #tpu.memory_space<smem>>
    %c5_8 = arith.constant 5 : index
    %17 = memref.load %arg3[%c5_8] : memref<6xf32, #tpu.memory_space<smem>>
    %c0_9 = arith.constant 0 : index
    %18 = memref.load %arg4[%c0_9] : memref<2xf32, #tpu.memory_space<smem>>
    %c1_10 = arith.constant 1 : index
    %19 = memref.load %arg4[%c1_10] : memref<2xf32, #tpu.memory_space<smem>>
    %c0_11 = arith.constant 0 : index
    %c0_12 = arith.constant 0 : index
    %c0_13 = arith.constant 0 : index
    %20 = vector.load %arg5[%c0_11, %c0_12, %c0_13] : memref<3x1x128xf32, #tpu.memory_space<vmem>>, vector<1x1x128xf32>
    %21 = vector.shape_cast %20 : vector<1x1x128xf32> to vector<1x128xf32>
    %c1_14 = arith.constant 1 : index
    %c0_15 = arith.constant 0 : index
    %c0_16 = arith.constant 0 : index
    %22 = vector.load %arg5[%c1_14, %c0_15, %c0_16] : memref<3x1x128xf32, #tpu.memory_space<vmem>>, vector<1x1x128xf32>
    %23 = vector.shape_cast %22 : vector<1x1x128xf32> to vector<1x128xf32>
    %c2_17 = arith.constant 2 : index
    %c0_18 = arith.constant 0 : index
    %c0_19 = arith.constant 0 : index
    %24 = vector.load %arg5[%c2_17, %c0_18, %c0_19] : memref<3x1x128xf32, #tpu.memory_space<vmem>>, vector<1x1x128xf32>
    %25 = vector.shape_cast %24 : vector<1x1x128xf32> to vector<1x128xf32>
    %26 = vector.broadcast %0 : f32 to vector<1x128xf32>
    %27 = arith.mulf %26, %21 : vector<1x128xf32>
    %28 = vector.broadcast %1 : f32 to vector<1x128xf32>
    %29 = arith.mulf %28, %23 : vector<1x128xf32>
    %30 = arith.addf %27, %29 : vector<1x128xf32>
    %31 = vector.broadcast %2 : f32 to vector<1x128xf32>
    %32 = arith.mulf %31, %25 : vector<1x128xf32>
    %33 = arith.addf %30, %32 : vector<1x128xf32>
    %34 = vector.broadcast %9 : f32 to vector<1x128xf32>
    %35 = arith.addf %33, %34 : vector<1x128xf32>
    %cst = arith.constant 0.000000e+00 : f32
    %36 = vector.broadcast %cst : f32 to vector<1x128xf32>
    %37 = arith.maximumf %35, %36 : vector<1x128xf32>
    %38 = vector.broadcast %3 : f32 to vector<1x128xf32>
    %39 = arith.mulf %38, %21 : vector<1x128xf32>
    %40 = vector.broadcast %4 : f32 to vector<1x128xf32>
    %41 = arith.mulf %40, %23 : vector<1x128xf32>
    %42 = arith.addf %39, %41 : vector<1x128xf32>
    %43 = vector.broadcast %5 : f32 to vector<1x128xf32>
    %44 = arith.mulf %43, %25 : vector<1x128xf32>
    %45 = arith.addf %42, %44 : vector<1x128xf32>
    %46 = vector.broadcast %10 : f32 to vector<1x128xf32>
    %47 = arith.addf %45, %46 : vector<1x128xf32>
    %cst_20 = arith.constant 0.000000e+00 : f32
    %48 = vector.broadcast %cst_20 : f32 to vector<1x128xf32>
    %49 = arith.maximumf %47, %48 : vector<1x128xf32>
    %50 = vector.broadcast %6 : f32 to vector<1x128xf32>
    %51 = arith.mulf %50, %21 : vector<1x128xf32>
    %52 = vector.broadcast %7 : f32 to vector<1x128xf32>
    %53 = arith.mulf %52, %23 : vector<1x128xf32>
    %54 = arith.addf %51, %53 : vector<1x128xf32>
    %55 = vector.broadcast %8 : f32 to vector<1x128xf32>
    %56 = arith.mulf %55, %25 : vector<1x128xf32>
    %57 = arith.addf %54, %56 : vector<1x128xf32>
    %58 = vector.broadcast %11 : f32 to vector<1x128xf32>
    %59 = arith.addf %57, %58 : vector<1x128xf32>
    %cst_21 = arith.constant 0.000000e+00 : f32
    %60 = vector.broadcast %cst_21 : f32 to vector<1x128xf32>
    %61 = arith.maximumf %59, %60 : vector<1x128xf32>
    %62 = vector.broadcast %12 : f32 to vector<1x128xf32>
    %63 = arith.mulf %62, %37 : vector<1x128xf32>
    %64 = vector.broadcast %13 : f32 to vector<1x128xf32>
    %65 = arith.mulf %64, %49 : vector<1x128xf32>
    %66 = arith.addf %63, %65 : vector<1x128xf32>
    %67 = vector.broadcast %14 : f32 to vector<1x128xf32>
    %68 = arith.mulf %67, %61 : vector<1x128xf32>
    %69 = arith.addf %66, %68 : vector<1x128xf32>
    %70 = vector.broadcast %18 : f32 to vector<1x128xf32>
    %71 = arith.addf %69, %70 : vector<1x128xf32>
    %c0_22 = arith.constant 0 : index
    %c0_23 = arith.constant 0 : index
    %c0_24 = arith.constant 0 : index
    %72 = vector.load %arg6[%c0_22, %c0_23, %c0_24] : memref<2x1x128xf32, #tpu.memory_space<vmem>>, vector<1x1x128xf32>
    %73 = vector.shape_cast %72 : vector<1x1x128xf32> to vector<1x128xf32>
    %74 = vector.shape_cast %71 : vector<1x128xf32> to vector<1x1x128xf32>
    tpu.vector_store %arg6[%c0_22, %c0_23, %c0_24], %74 {strides = array<i32>} : memref<2x1x128xf32, #tpu.memory_space<vmem>>, vector<1x1x128xf32>,
    %75 = vector.broadcast %15 : f32 to vector<1x128xf32>
    %76 = arith.mulf %75, %37 : vector<1x128xf32>
    %77 = vector.broadcast %16 : f32 to vector<1x128xf32>
    %78 = arith.mulf %77, %49 : vector<1x128xf32>
    %79 = arith.addf %76, %78 : vector<1x128xf32>
    %80 = vector.broadcast %17 : f32 to vector<1x128xf32>
    %81 = arith.mulf %80, %61 : vector<1x128xf32>
    %82 = arith.addf %79, %81 : vector<1x128xf32>
    %83 = vector.broadcast %19 : f32 to vector<1x128xf32>
    %84 = arith.addf %82, %83 : vector<1x128xf32>
    %c1_25 = arith.constant 1 : index
    %c0_26 = arith.constant 0 : index
    %c0_27 = arith.constant 0 : index
    %85 = vector.load %arg6[%c1_25, %c0_26, %c0_27] : memref<2x1x128xf32, #tpu.memory_space<vmem>>, vector<1x1x128xf32>
    %86 = vector.shape_cast %85 : vector<1x1x128xf32> to vector<1x128xf32>
    %87 = vector.shape_cast %84 : vector<1x128xf32> to vector<1x1x128xf32>
    tpu.vector_store %arg6[%c1_25, %c0_26, %c0_27], %87 {strides = array<i32>} : memref<2x1x128xf32, #tpu.memory_space<vmem>>, vector<1x1x128xf32>,
    return
  }
  func.func @transform_0(%arg0: i32) -> i32 {
    %c0_i32 = arith.constant 0 : i32
    %c0_i32_0 = arith.constant 0 : i32
    return %c0_i32 : i32
  }
  func.func @transform_1(%arg0: i32) -> i32 {
    %c0_i32 = arith.constant 0 : i32
    %c0_i32_0 = arith.constant 0 : i32
    return %c0_i32 : i32
  }
  func.func @transform_2(%arg0: i32) -> i32 {
    %c0_i32 = arith.constant 0 : i32
    %c0_i32_0 = arith.constant 0 : i32
    return %c0_i32 : i32
  }
  func.func @transform_3(%arg0: i32) -> i32 {
    %c0_i32 = arith.constant 0 : i32
    %c0_i32_0 = arith.constant 0 : i32
    return %c0_i32 : i32
  }
  func.func @transform_4(%arg0: i32) -> (i32, i32, i32) {
    %c0_i32 = arith.constant 0 : i32
    %c0_i32_0 = arith.constant 0 : i32
    %c0_i32_1 = arith.constant 0 : i32
    return %c0_i32, %arg0, %c0_i32_0 : i32, i32, i32
  }
  func.func @transform_5(%arg0: i32) -> (i32, i32, i32) {
    %c0_i32 = arith.constant 0 : i32
    %c0_i32_0 = arith.constant 0 : i32
    %c0_i32_1 = arith.constant 0 : i32
    return %c0_i32, %arg0, %c0_i32_0 : i32, i32, i32
  }
}

</mosaic_0001>

<bundles_post_ra>
// kernel: tpu_custom_call.1
= control target key start
LH: loop header
LB: loop body
LE: loop exit
PB: predicated region body
PF: predicated region fallthrough
CT: control target
= control target key end

     0   :  { %10 = vsyncpa [#allocation4], 0  ;;  %s346_s0 = inlined_call_operand.hbm [shape: f32[9], index: 0, kind: input, shape index: {}]   ;;  %s347_s1 = inlined_call_operand.hbm [shape: f32[3], index: 1, kind: input, shape index: {}]   ;;  %s348_s2 = inlined_call_operand.hbm [shape: f32[6], index: 2, kind: input, shape index: {}]   ;;  %s349_s3 = inlined_call_operand.hbm [shape: f32[2], index: 3, kind: input, shape index: {}]   ;;  %s350_s4 = inlined_call_operand.vmem [shape: f32[3,1,128], index: 4, kind: input, shape index: {}]   ;;  %s351_s5 = inlined_call_operand.hbm [shape: f32[2,1,128], index: 5, kind: output, shape index: {}]  }
   0x1   :  { %11 = vsyncpa [#allocation6], 0 }
   0x2   :  { %12 = vsyncpa [#allocation9], 0  ;;  %s28_s20 = sshll.u32 %s347_s1, 4  ;;  %s29_s20 = int_to_ptr.hbm [resolvable:$true] %s28_s20 }
   0x3   :  { %13 = vsyncpa [#allocation3], 0  ;;  %s19_s23 = sshll.u32 %s346_s0, 4  ;;  %s276_s24 = smov [#allocation5]   ;;  %s20_s23 = int_to_ptr.hbm [resolvable:$true] %s19_s23 }
   0x4   :  { %31 = dma.hbm_to_smem %s29_s20, 16, %s276_s24, [#allocation6]  }
   0x5   :  { %s277_s25 = smov [#allocation2]   ;;  %s37_s28 = sshll.u32 %s348_s2, 4  ;;  %s38_s28 = int_to_ptr.hbm [resolvable:$true] %s37_s28 }
   0x6   :  { %22 = dma.hbm_to_smem %s20_s23, 16, %s277_s25, [#allocation4]  }
   0x7   :  { %s46_s1 = sshll.u32 %s349_s3, 4  ;;  %s278_s6 = smov [#allocation7]   ;;  %s47_s1 = int_to_ptr.hbm [resolvable:$true] %s46_s1 }
   0x8   :  { %40 = dma.hbm_to_smem %s38_s28, 16, %s278_s6, [#allocation6]  }
   0x9   :  { %s279_s7 = smov [#allocation8]  }
   0xa   :  { %49 = dma.hbm_to_smem %s47_s1, 16, %s279_s7, [#allocation9]  }
   0xb   :  { %268 = dma.done.wait [#allocation4], 16  }
   0xc   :  { %269 = vsyncadd [#allocation4], 4294967280 }
   0xd   :  { %270 = dma.done.wait [#allocation6], 32  }
   0xe   :  { %271 = vsyncadd [#allocation6], 4294967264 }
   0xf   :  { %272 = dma.done.wait [#allocation9], 16  }
  0x10   :  { %273 = vsyncadd [#allocation9], 4294967280 }
  0x11   :  { %68 = sfence }
  0x12   :  { %s69_s0 = sld [smem:[#allocation2]]  ;;  %v89_v0 = vld [vmem:[%s350_s4] sm:$0x1]  ;;  %v187_v1 = vld [vmem:[%s350_s4 + $0x1] sm:$0x1]  ;;  %s280_s30 = smov [#allocation10]  }
  0x13   :  { %s171_s8 = sld [smem:[#allocation2 + $0x1]]  ;;  %v188_v2 = vld [vmem:[%s350_s4 + $0x2] sm:$0x1]  ;;  %s154_s1 = sshll.u32 %s280_s30, 4  ;;  %s155_s1 = int_to_ptr.vmem [resolvable:$true] %s154_s1 }
  0x14   :  { %s172_s2 = sld [smem:[#allocation2 + $0x2]] }
  0x15   :  { %s173_s9 = sld [smem:[#allocation2 + $0x3]] }
  0x16   :  { %s174_s10 = sld [smem:[#allocation2 + $0x4]] }
  0x17   :  { %s175_s3 = sld [smem:[#allocation2 + $0x5]] }
  0x18   :  { %s176_s15 = sld [smem:[#allocation2 + $0x6]]  ;;  %v94_v3 = vstv %s69_s0  ;;  %s156_s0 = sshll.u32 %s351_s5, 4  ;;  %s157_s0 = int_to_ptr.hbm [resolvable:$true] %s156_s0 }
  0x19   :  { %s177_s18 = sld [smem:[#allocation2 + $0x7]]  ;;  %v95_v4 = vmul.f32 %v94_v3, %v89_v0  ;;  %v96_v5 = vstv %s171_s8  ;;  %s281_s8 = smov 16  }
  0x1a   :  { %s178_s19 = sld [smem:[#allocation2 + $0x8]]  ;;  %v97_v6 = vmul.f32 %v187_v1, %v96_v5  ;;  %v99_v7 = vstv %s172_s2  ;;  %s282_s2 = smov 1  }
  0x1b   :  { %s78_s20 = sld [smem:[#allocation5]]  ;;  %v100_v8 = vmul.f32 %v188_v2, %v99_v7  ;;  %v105_v9 = vstv %s173_s9 }
  0x1c   :  { %s179_s21 = sld [smem:[#allocation5 + $0x1]]  ;;  %v98_v10 = vadd.f32 %v97_v6, %v95_v4  ;;  %v106_v11 = vmul.f32 %v105_v9, %v89_v0  ;;  %v107_v12 = vstv %s174_s10 }
  0x1d   :  { %s334_s22 = sld [smem:[#allocation5 + $0x2]]  ;;  %v108_v13 = vmul.f32 %v187_v1, %v107_v12  ;;  %v110_v14 = vstv %s175_s3 }
  0x1e   :  { %s81_s23 = sld [smem:[#allocation7]]  ;;  %v101_v15 = vadd.f32 %v100_v8, %v98_v10  ;;  %v111_v16 = vmul.f32 %v188_v2, %v110_v14  ;;  %v116_v17 = vstv %s176_s15 }
  0x1f   :  { %s181_s4 = sld [smem:[#allocation7 + $0x1]]  ;;  %v109_v18 = vadd.f32 %v108_v13, %v106_v11  ;;  %v117_v19 = vmul.f32 %v116_v17, %v89_v0  ;;  %v118_v20 = vstv %s177_s18 }
  0x20   :  { %s336_s24 = sld [smem:[#allocation7 + $0x2]]  ;;  %v119_v21 = vmul.f32 %v187_v1, %v118_v20  ;;  %v121_v22 = vstv %s178_s19 }
  0x21   :  { %s338_s25 = sld [smem:[#allocation8]]  ;;  %v102_v23 = vstv %s78_s20  ;;  %v112_v24 = vadd.f32 %v111_v16, %v109_v18  ;;  %v122_v25 = vmul.f32 %v188_v2, %v121_v22 }
  0x22   :  { %v103_v26 = vadd.f32 %v102_v23, %v101_v15  ;;  %v113_v27 = vstv %s179_s21  ;;  %v120_v28 = vadd.f32 %v119_v21, %v117_v19  ;;  %s183_s26 = sld [smem:[#allocation7 + $0x3]] }
  0x23   :  { %v114_v29 = vadd.f32 %v113_v27, %v112_v24  ;;  %v124_v30 = vstv %s334_s22  ;;  %s184_s27 = sld [smem:[#allocation7 + $0x4]] }
  0x24   :  { %v104_v31 = vmax.f32 %v103_v26, 0.0  ;;  %v123_v32 = vadd.f32 %v122_v25, %v120_v28  ;;  %v127_v33 = vstv %s81_s23  ;;  %s185_s28 = sld [smem:[#allocation7 + $0x5]] }
  0x25   :  { %v115_v34 = vmax.f32 %v114_v29, 0.0  ;;  %v129_v35 = vstv %s181_s4  ;;  %s186_s29 = sld [smem:[#allocation8 + $0x1]] }
  0x26   :  { %v125_v36 = vadd.f32 %v124_v30, %v123_v32  ;;  %v128_v37 = vmul.f32 %v127_v33, %v104_v31  ;;  %v132_v39 = vstv %s336_s24 }
  0x27   :  { %v130_v38 = vmul.f32 %v129_v35, %v115_v34  ;;  %v135_v48 = vstv %s338_s25 }
  0x28   :  { %v126_v40 = vmax.f32 %v125_v36, 0.0  ;;  %v138_v41 = vstv %s183_s26 }
  0x29   :  { %v131_v42 = vadd.f32 %v130_v38, %v128_v37  ;;  %v139_v43 = vmul.f32 %v138_v41, %v104_v31  ;;  %v140_v44 = vstv %s184_s27 }
  0x2a   :  { %v133_v45 = vmul.f32 %v132_v39, %v126_v40  ;;  %v141_v46 = vmul.f32 %v140_v44, %v115_v34  ;;  %v143_v47 = vstv %s185_s28 }
  0x2b   :  { %v144_v49 = vmul.f32 %v143_v47, %v126_v40  ;;  %v146_v52 = vstv %s186_s29 }
  0x2c   :  { %v134_v50 = vadd.f32 %v133_v45, %v131_v42  ;;  %v142_v51 = vadd.f32 %v141_v46, %v139_v43 }
  0x2e   :  { %v136_v53 = vadd.f32 %v135_v48, %v134_v50  ;;  %v145_v54 = vadd.f32 %v144_v49, %v142_v51 }
  0x30   :  { %137 = vst [vmem:[#allocation10] sm:$0x1] %v136_v53  ;;  %v147_v55 = vadd.f32 %v146_v52, %v145_v54 }
  0x32   :  { %149 = vst [vmem:[#allocation10 + $0x1] sm:$0x1] %v147_v55 }
  0x33   :  { %162 = dma.vmem_to_hbm [thread:$0]  %s155_s1, 32, %s157_s0, [#allocation3], %s281_s8, %s281_s8, %s282_s2  }
  0x34   :  { %274 = dma.done.wait [#allocation3], 32  }
  0x35   :  { %275 = vsyncadd [#allocation3], 4294967264 }
  0x36   :  { %167 = vsyncpa [#allocation3], 1 }
  0x37   :  { %168 = vsyncpa [#allocation4], 1 }
  0x38   :  { %169 = vsyncpa [#allocation6], 1 }
  0x39   :  { %170 = vsyncpa [#allocation9], 1 }

</bundles_post_ra>
